<compile_context>
chip_gen: v6e
topology: v6e:2x2x1
jax: 0.10.0
libtpu: 0.0.40
codegen_flags: <defaults>
</compile_context>

<pallas_src>
import jax
import jax.numpy as jnp
from jax.experimental import pallas as pl
from jax.experimental.pallas import tpu as pltpu

HIDDEN_SIZE = 256
INPUT_SIZE = 13
NUM_CLASSES = 2
K_PAD = 16            # layer-1 contraction padded to bf16 sublane tile
OUT_PAD = 128         # lane-dense padded output width
BN_EPS = 1e-5

# Sublane offsets inside the packed (400, 256) bf16 weight array.
_W1_OFF = 0                       # rows [0, 16)
_W2_OFF = K_PAD                   # rows [16, 272)
_W3T_OFF = K_PAD + HIDDEN_SIZE    # rows [272, 400), w3 stored transposed
_WPACK_ROWS = K_PAD + HIDDEN_SIZE + OUT_PAD   # 400

# Row indices inside the packed (8, 256) f32 per-feature-vector array.
_ROW_G1, _ROW_BE1, _ROW_G2, _ROW_BE2, _ROW_B3 = 0, 1, 2, 3, 4


def _bn_relu_fused(h, gamma, beta):
    """Training-mode BatchNorm1d + ReLU, affine fused into scale/shift (f32)."""
    mean = jnp.mean(h, axis=0, keepdims=True)
    mean_sq = jnp.mean(h * h, axis=0, keepdims=True)
    var = jnp.maximum(mean_sq - mean * mean, 0.0)   # guard tiny cancellation
    scale = gamma * jax.lax.rsqrt(var + BN_EPS)
    shift = beta - mean * scale
    return jnp.maximum(h * scale + shift, 0.0)


def mlp_kernel(x_ref, wpack_ref, vpack_ref, o_ref):
    x = x_ref[...]                                   # (B, 16) bf16
    pv = vpack_ref[...]                              # (8, 256) f32

    g1 = pv[_ROW_G1:_ROW_G1 + 1, :]
    be1 = pv[_ROW_BE1:_ROW_BE1 + 1, :]
    g2 = pv[_ROW_G2:_ROW_G2 + 1, :]
    be2 = pv[_ROW_BE2:_ROW_BE2 + 1, :]
    b3 = pv[_ROW_B3:_ROW_B3 + 1, :OUT_PAD]           # (1, 128)

    # Static, sublane-aligned views into the packed bf16 weights.
    w1 = wpack_ref[_W1_OFF:_W1_OFF + K_PAD, :]            # (16, 256)
    w2 = wpack_ref[_W2_OFF:_W2_OFF + HIDDEN_SIZE, :]      # (256, 256)
    w3t = wpack_ref[_W3T_OFF:_W3T_OFF + OUT_PAD, :]       # (128, 256) = w3^T

    # Layer 1: bf16 x bf16 -> f32 (bias dropped; cancelled by BN mean), BN+ReLU
    h = jnp.dot(x, w1, preferred_element_type=jnp.float32)
    h = _bn_relu_fused(h, g1, be1)

    # Layer 2: bf16 LHS, native MXU path, BN+ReLU
    h = jnp.dot(h.astype(jnp.bfloat16), w2, preferred_element_type=jnp.float32)
    h = _bn_relu_fused(h, g2, be2)

    # Layer 3: trans_b dot against packed w3^T, lane-dense (B, 128) output
    out = jax.lax.dot_general(
        h.astype(jnp.bfloat16), w3t,
        dimension_numbers=(((1,), (1,)), ((), ())),
        preferred_element_type=jnp.float32) + b3
    o_ref[...] = out.astype(o_ref.dtype)


def _prepare_operands(params):
    """Pack weights (bf16, one array) and per-feature vectors (f32, one array)."""
    w1p = jnp.zeros((K_PAD, HIDDEN_SIZE), jnp.float32)
    w1p = w1p.at[:INPUT_SIZE, :].set(params["w1"])                 # (16, 256)

    w3t = jnp.zeros((OUT_PAD, HIDDEN_SIZE), jnp.float32)
    w3t = w3t.at[:NUM_CLASSES, :].set(params["w3"].T)              # (128, 256)

    wpack = jnp.concatenate([w1p, params["w2"], w3t], axis=0)      # (400, 256)
    wpack = wpack.astype(jnp.bfloat16)

    vpack = jnp.zeros((8, HIDDEN_SIZE), jnp.float32)
    vpack = vpack.at[_ROW_G1, :].set(params["g1"][0])
    vpack = vpack.at[_ROW_BE1, :].set(params["be1"][0])
    vpack = vpack.at[_ROW_G2, :].set(params["g2"][0])
    vpack = vpack.at[_ROW_BE2, :].set(params["be2"][0])
    vpack = vpack.at[_ROW_B3, :NUM_CLASSES].set(params["b3"][0])
    return wpack, vpack


def mlp_forward(x, params):
    """x: (B, INPUT_SIZE) f32.  params: dict of f32 arrays (see init_params)."""
    B = x.shape[0]
    wpack, vpack = _prepare_operands(params)

    # Pad x to K=16 (zero columns contribute nothing) and cast to bf16.
    x_pad = jnp.zeros((B, K_PAD), jnp.float32).at[:, :INPUT_SIZE].set(x)
    x_pad = x_pad.astype(jnp.bfloat16)

    args = (x_pad, wpack, vpack)
    vmem_spec = pl.BlockSpec(memory_space=pltpu.MemorySpace.VMEM)

    flops = 2 * B * (K_PAD * HIDDEN_SIZE
                     + HIDDEN_SIZE * HIDDEN_SIZE
                     + HIDDEN_SIZE * OUT_PAD)
    bytes_accessed = sum(int(a.size) * a.dtype.itemsize for a in args) \
        + B * OUT_PAD * 4

    out_padded = pl.pallas_call(
        mlp_kernel,
        out_shape=jax.ShapeDtypeStruct((B, OUT_PAD), jnp.float32),
        in_specs=[vmem_spec] * len(args),
        out_specs=vmem_spec,
        cost_estimate=pl.CostEstimate(
            flops=flops,
            transcendentals=2 * HIDDEN_SIZE,       # rsqrt per BN feature
            bytes_accessed=bytes_accessed),
    )(*args)
    # Lane-dense store inside the kernel; trim padding outside.
    return out_padded[:, :NUM_CLASSES]


def init_params(key):
    """Deterministic init mirroring the shapes of the PyTorch module."""
    ks = jax.random.split(key, 6)

    def linear(kw, kb, fan_in, fan_out):
        bound = 1.0 / jnp.sqrt(fan_in)
        w = jax.random.uniform(kw, (fan_in, fan_out), jnp.float32, -bound, bound)
        b = jax.random.uniform(kb, (1, fan_out), jnp.float32, -bound, bound)
        return w, b

    w1, b1 = linear(ks[0], ks[1], INPUT_SIZE, HIDDEN_SIZE)
    w2, b2 = linear(ks[2], ks[3], HIDDEN_SIZE, HIDDEN_SIZE)
    w3, b3 = linear(ks[4], ks[5], HIDDEN_SIZE, NUM_CLASSES)

    return dict(
        w1=w1, b1=b1,
        g1=jnp.ones((1, HIDDEN_SIZE), jnp.float32),
        be1=jnp.zeros((1, HIDDEN_SIZE), jnp.float32),
        w2=w2, b2=b2,
        g2=jnp.ones((1, HIDDEN_SIZE), jnp.float32),
        be2=jnp.zeros((1, HIDDEN_SIZE), jnp.float32),
        w3=w3, b3=b3,
    )


def mlp_reference(x, p):
    """Pure-JAX reference with full PyTorch semantics (incl. b1/b2, two-pass
    variance, f32 activations), using the same bf16-rounded weights the kernel
    sees.  Kernel additionally uses bf16 activations at the matmul inputs, so
    the comparison tolerance is a few e-3."""
    w1 = p["w1"].astype(jnp.bfloat16).astype(jnp.float32)
    w2 = p["w2"].astype(jnp.bfloat16).astype(jnp.float32)
    w3 = p["w3"].astype(jnp.bfloat16).astype(jnp.float32)

    def bn_relu(h, g, be):
        m = jnp.mean(h, axis=0, keepdims=True)
        v = jnp.mean((h - m) ** 2, axis=0, keepdims=True)
        return jnp.maximum((h - m) * jax.lax.rsqrt(v + BN_EPS) * g + be, 0.0)

    h = bn_relu(x @ w1 + p["b1"], p["g1"], p["be1"])
    h = bn_relu(h @ w2 + p["b2"], p["g2"], p["be2"])
    return h @ w3 + p["b3"]


if __name__ == "__main__":
    key = jax.random.PRNGKey(0)
    k_x, k_p = jax.random.split(key)

    B = 8  # BatchNorm needs B > 1 for finite statistics
    x = jax.random.normal(k_x, (B, INPUT_SIZE), jnp.float32)
    params = init_params(k_p)

    out = mlp_forward(x, params)
    out = jax.block_until_ready(out)

    ref = mlp_reference(x, params)
    assert out.shape == (B, NUM_CLASSES)
    # bf16 activations at the dot inputs -> allow a few e-3 absolute error.
    assert jnp.allclose(out, ref, atol=2e-2, rtol=2e-2), "mismatch vs reference"

    print("KERNEL_OK")
</pallas_src>

<mosaic_0001>
module attributes {stable_mosaic.version = 11 : i64} {
  func.func @mlp_kernel(%arg0: memref<8x16xbf16, #tpu.memory_space<vmem>>, %arg1: memref<400x256xbf16, #tpu.memory_space<vmem>>, %arg2: memref<8x256xf32, #tpu.memory_space<vmem>>, %arg3: memref<8x128xf32, #tpu.memory_space<vmem>>) attributes {dimension_semantics = [], scalar_prefetch = 0 : i64, scratch_operands = 0 : i64, tpu.core_type = #tpu.core_type<tc>} {
    %c0 = arith.constant 0 : index
    %c0_0 = arith.constant 0 : index
    %0 = vector.load %arg0[%c0, %c0_0] : memref<8x16xbf16, #tpu.memory_space<vmem>>, vector<8x16xbf16>
    %c0_1 = arith.constant 0 : index
    %c0_2 = arith.constant 0 : index
    %1 = vector.load %arg2[%c0_1, %c0_2] : memref<8x256xf32, #tpu.memory_space<vmem>>, vector<8x256xf32>
    %2 = vector.extract_strided_slice %1 {offsets = [0, 0], sizes = [1, 256], strides = [1, 1]} : vector<8x256xf32> to vector<1x256xf32>
    %3 = vector.extract_strided_slice %1 {offsets = [1, 0], sizes = [1, 256], strides = [1, 1]} : vector<8x256xf32> to vector<1x256xf32>
    %4 = vector.extract_strided_slice %1 {offsets = [2, 0], sizes = [1, 256], strides = [1, 1]} : vector<8x256xf32> to vector<1x256xf32>
    %5 = vector.extract_strided_slice %1 {offsets = [3, 0], sizes = [1, 256], strides = [1, 1]} : vector<8x256xf32> to vector<1x256xf32>
    %6 = vector.extract_strided_slice %1 {offsets = [4, 0], sizes = [1, 128], strides = [1, 1]} : vector<8x256xf32> to vector<1x128xf32>
    %c0_3 = arith.constant 0 : index
    %c0_4 = arith.constant 0 : index
    %7 = vector.load %arg1[%c0_3, %c0_4] : memref<400x256xbf16, #tpu.memory_space<vmem>>, vector<16x256xbf16>
    %c16 = arith.constant 16 : index
    %c0_5 = arith.constant 0 : index
    %8 = vector.load %arg1[%c16, %c0_5] : memref<400x256xbf16, #tpu.memory_space<vmem>>, vector<256x256xbf16>
    %c272 = arith.constant 272 : index
    %c0_6 = arith.constant 0 : index
    %9 = vector.load %arg1[%c272, %c0_6] : memref<400x256xbf16, #tpu.memory_space<vmem>>, vector<128x256xbf16>
    %cst = arith.constant dense<0.000000e+00> : vector<8x256xf32>
    %10 = tpu.matmul %0, %7, %cst {dimension_numbers = #tpu.dot_dimension_numbers<[1], [0], [0], [1], [0, 0, 1, 1], [], []>} : vector<8x16xbf16>, vector<16x256xbf16>, vector<8x256xf32> -> vector<8x256xf32>
    %cst_7 = arith.constant dense<0.000000e+00> : vector<256xf32>
    %11 = vector.multi_reduction <add>, %10, %cst_7 [0] : vector<8x256xf32> to vector<256xf32>
    %12 = vector.shape_cast %11 : vector<256xf32> to vector<1x256xf32>
    %cst_8 = arith.constant 8.000000e+00 : f32
    %13 = vector.broadcast %cst_8 : f32 to vector<1x256xf32>
    %14 = arith.divf %12, %13 : vector<1x256xf32>
    %15 = arith.mulf %10, %10 : vector<8x256xf32>
    %cst_9 = arith.constant dense<0.000000e+00> : vector<256xf32>
    %16 = vector.multi_reduction <add>, %15, %cst_9 [0] : vector<8x256xf32> to vector<256xf32>
    %17 = vector.shape_cast %16 : vector<256xf32> to vector<1x256xf32>
    %cst_10 = arith.constant 8.000000e+00 : f32
    %18 = vector.broadcast %cst_10 : f32 to vector<1x256xf32>
    %19 = arith.divf %17, %18 : vector<1x256xf32>
    %20 = arith.mulf %14, %14 : vector<1x256xf32>
    %21 = arith.subf %19, %20 : vector<1x256xf32>
    %cst_11 = arith.constant 0.000000e+00 : f32
    %22 = vector.broadcast %cst_11 : f32 to vector<1x256xf32>
    %23 = arith.maximumf %21, %22 : vector<1x256xf32>
    %cst_12 = arith.constant 9.99999974E-6 : f32
    %24 = vector.broadcast %cst_12 : f32 to vector<1x256xf32>
    %25 = arith.addf %23, %24 : vector<1x256xf32>
    %26 = math.rsqrt %25 : vector<1x256xf32>
    %27 = arith.mulf %2, %26 : vector<1x256xf32>
    %28 = arith.mulf %14, %27 : vector<1x256xf32>
    %29 = arith.subf %3, %28 : vector<1x256xf32>
    %30 = vector.broadcast %27 : vector<1x256xf32> to vector<8x256xf32>
    %31 = arith.mulf %10, %30 : vector<8x256xf32>
    %32 = vector.broadcast %29 : vector<1x256xf32> to vector<8x256xf32>
    %33 = arith.addf %31, %32 : vector<8x256xf32>
    %cst_13 = arith.constant 0.000000e+00 : f32
    %34 = vector.broadcast %cst_13 : f32 to vector<8x256xf32>
    %35 = arith.maximumf %33, %34 : vector<8x256xf32>
    %36 = arith.truncf %35 : vector<8x256xf32> to vector<8x256xbf16>
    %cst_14 = arith.constant dense<0.000000e+00> : vector<8x256xf32>
    %37 = tpu.matmul %36, %8, %cst_14 {dimension_numbers = #tpu.dot_dimension_numbers<[1], [0], [0], [1], [0, 0, 1, 1], [], []>} : vector<8x256xbf16>, vector<256x256xbf16>, vector<8x256xf32> -> vector<8x256xf32>
    %cst_15 = arith.constant dense<0.000000e+00> : vector<256xf32>
    %38 = vector.multi_reduction <add>, %37, %cst_15 [0] : vector<8x256xf32> to vector<256xf32>
    %39 = vector.shape_cast %38 : vector<256xf32> to vector<1x256xf32>
    %cst_16 = arith.constant 8.000000e+00 : f32
    %40 = vector.broadcast %cst_16 : f32 to vector<1x256xf32>
    %41 = arith.divf %39, %40 : vector<1x256xf32>
    %42 = arith.mulf %37, %37 : vector<8x256xf32>
    %cst_17 = arith.constant dense<0.000000e+00> : vector<256xf32>
    %43 = vector.multi_reduction <add>, %42, %cst_17 [0] : vector<8x256xf32> to vector<256xf32>
    %44 = vector.shape_cast %43 : vector<256xf32> to vector<1x256xf32>
    %cst_18 = arith.constant 8.000000e+00 : f32
    %45 = vector.broadcast %cst_18 : f32 to vector<1x256xf32>
    %46 = arith.divf %44, %45 : vector<1x256xf32>
    %47 = arith.mulf %41, %41 : vector<1x256xf32>
    %48 = arith.subf %46, %47 : vector<1x256xf32>
    %cst_19 = arith.constant 0.000000e+00 : f32
    %49 = vector.broadcast %cst_19 : f32 to vector<1x256xf32>
    %50 = arith.maximumf %48, %49 : vector<1x256xf32>
    %cst_20 = arith.constant 9.99999974E-6 : f32
    %51 = vector.broadcast %cst_20 : f32 to vector<1x256xf32>
    %52 = arith.addf %50, %51 : vector<1x256xf32>
    %53 = math.rsqrt %52 : vector<1x256xf32>
    %54 = arith.mulf %4, %53 : vector<1x256xf32>
    %55 = arith.mulf %41, %54 : vector<1x256xf32>
    %56 = arith.subf %5, %55 : vector<1x256xf32>
    %57 = vector.broadcast %54 : vector<1x256xf32> to vector<8x256xf32>
    %58 = arith.mulf %37, %57 : vector<8x256xf32>
    %59 = vector.broadcast %56 : vector<1x256xf32> to vector<8x256xf32>
    %60 = arith.addf %58, %59 : vector<8x256xf32>
    %cst_21 = arith.constant 0.000000e+00 : f32
    %61 = vector.broadcast %cst_21 : f32 to vector<8x256xf32>
    %62 = arith.maximumf %60, %61 : vector<8x256xf32>
    %63 = arith.truncf %62 : vector<8x256xf32> to vector<8x256xbf16>
    %cst_22 = arith.constant dense<0.000000e+00> : vector<8x128xf32>
    %64 = tpu.matmul %63, %9, %cst_22 {dimension_numbers = #tpu.dot_dimension_numbers<[1], [1], [0], [0], [0, 0, 1, 0], [], []>} : vector<8x256xbf16>, vector<128x256xbf16>, vector<8x128xf32> -> vector<8x128xf32>
    %65 = vector.broadcast %6 : vector<1x128xf32> to vector<8x128xf32>
    %66 = arith.addf %64, %65 : vector<8x128xf32>
    %c0_23 = arith.constant 0 : index
    %c0_24 = arith.constant 0 : index
    %67 = vector.load %arg3[%c0_23, %c0_24] : memref<8x128xf32, #tpu.memory_space<vmem>>, vector<8x128xf32>
    tpu.vector_store %arg3[%c0_23, %c0_24], %66 {strides = array<i32>} : memref<8x128xf32, #tpu.memory_space<vmem>>, vector<8x128xf32>,
    return
  }
}

</mosaic_0001>

<bundles_post_ra>
// kernel: tpu_custom_call.1
= control target key start
LH: loop header
LB: loop body
LE: loop exit
PB: predicated region body
PF: predicated region fallthrough
CT: control target
= control target key end

     0   :  { %8 = vsyncpa [#allocation3], 0  ;;  %s942_s0 = inlined_call_operand.hbm [shape: bf16[8,16], index: 0, kind: input, shape index: {}]   ;;  %s943_s1 = inlined_call_operand.hbm [shape: bf16[400,256], index: 1, kind: input, shape index: {}]   ;;  %s944_s2 = inlined_call_operand.hbm [shape: f32[8,256], index: 2, kind: input, shape index: {}]   ;;  %s945_s3 = inlined_call_operand.hbm [shape: f32[8,128], index: 3, kind: output, shape index: {}]  }
   0x1   :  { %9 = vsyncpa [#allocation6], 0 }
   0x2   :  { %10 = vsyncpa [#allocation4], 0  ;;  %s883_s12 = smov [#allocation5]  }
   0x3   :  { %s26_s13 = sshll.u32 %s883_s12, 4  ;;  %s27_s13 = int_to_ptr.vmem [resolvable:$true] %s26_s13 }
   0x4   :  { %s805_s14 = scalar_lea.vmem %s27_s13, 6400  ;;  %p810_p1 = scmp.lt.s32.totalorder %s27_s13, %s27_s13 }
   0x5   :  { %p806_p0 = scmp.ne.s32.totalorder %s27_s13, %s805_s14  ;;  %p811_p2 = scmp.lt.s32.totalorder %s805_s14, %s805_s14 }
   0x7   :  { %p812_p3 = por %p811_p2, %p810_p1 }
   0x9   :  { %p813_p4 = pnand %p812_p3, %p806_p0 }
   0xb   :  { %816 = shalt.err (!%p813_p4)
}
   0xc   :  { %s884_s15 = smov 128   ;;  %s885_s16 = smov 8  }
   0xd   :  { %32 = dma.hbm_to_vmem [thread:$0]  %s943_s1, 6400, %s27_s13, [#allocation6], %s884_s15, %s884_s15, %s885_s16  }
   0xe   :  { %s886_s19 = smov [#allocation2]   ;;  %s887_s21 = smov [#allocation7]  }
   0xf   :  { %s17_s20 = sshll.u32 %s886_s19, 4  ;;  %s39_s22 = sshll.u32 %s887_s21, 4  ;;  %s18_s20 = int_to_ptr.vmem [resolvable:$true] %s17_s20  ;;  %s40_s22 = int_to_ptr.vmem [resolvable:$true] %s39_s22 }
  0x10   :  { %s825_s23 = scalar_lea.vmem %s18_s20, 64  ;;  %p830_p6 = scmp.lt.s32.totalorder %s18_s20, %s18_s20 }
  0x11   :  { %p826_p5 = scmp.ne.s32.totalorder %s18_s20, %s825_s23  ;;  %p831_p7 = scmp.lt.s32.totalorder %s825_s23, %s825_s23 }
  0x13   :  { %p832_p8 = por %p831_p7, %p830_p6 }
  0x15   :  { %p833_p9 = pnand %p832_p8, %p826_p5 }
  0x17   :  { %836 = shalt.err (!%p833_p9)
}
  0x18   :  { %20 = dma.hbm_to_vmem [thread:$0]  %s942_s0, 64, %s18_s20, [#allocation3]  }
  0x19   :  { %s845_s26 = scalar_lea.vmem %s40_s22, 256  ;;  %p850_p11 = scmp.lt.s32.totalorder %s40_s22, %s40_s22 }
  0x1a   :  { %p846_p10 = scmp.ne.s32.totalorder %s40_s22, %s845_s26  ;;  %p851_p12 = scmp.lt.s32.totalorder %s845_s26, %s845_s26 }
  0x1c   :  { %p852_p13 = por %p851_p12, %p850_p11 }
  0x1e   :  { %p853_p0 = pnand %p852_p13, %p846_p10 }
  0x20   :  { %856 = shalt.err (!%p853_p0)
}
  0x21   :  { %42 = dma.hbm_to_vmem [thread:$0]  %s944_s2, 256, %s40_s22, [#allocation6]  }
  0x22   :  { %877 = dma.done.wait [#allocation3], 64  }
  0x23   :  { %878 = vsyncadd [#allocation3], 4294967232 }
  0x24   :  { %879 = dma.done.wait [#allocation6], 6656  }
  0x25   :  { %880 = vsyncadd [#allocation6], 4294960640  ;;  %v888_v0 = vmov 0   ;;  %v714_v1 = vld [vmem:[#allocation5 + $0x4] ss:$8 sps:$4 sm:$0xff]   ;;  %vm116_vm0 = vcmask 130048  }
  0x26   :  { %152 = vmatprep.mubr.bf16.mxu0 %v888_v0  ;;  %v716_v2 = vld [vmem:[#allocation5] ss:$8 sps:$4 sm:$0xff]   ;;  %v53_v3 = vld [vmem:[#allocation2] sm:$0xf]  ;;  %134 = vmatprep.subr.bf16.mxu0 %v714_v1  ;;  %v717_v4 = vld [vmem:[#allocation5 + $0x84] ss:$8 sps:$4 sm:$0xff]  }
  0x27   :  { %v719_v5 = vld [vmem:[#allocation5 + $0x80] ss:$8 sps:$4 sm:$0xff]   ;;  %135 = vmatpush1.bf16.msra.mxu0 %v716_v2  ;;  %v720_v6 = vld [vmem:[#allocation5 + $0x74] ss:$8 sps:$4 sm:$0xff]   ;;  %398 = vmatprep.subr.bf16.mxu1 %v717_v4  ;;  %v722_v7 = vld [vmem:[#allocation5 + $0x70] ss:$8 sps:$4 sm:$0xff]  }
  0x28   :  { %399 = vmatpush1.bf16.msra.mxu1 %v719_v5  ;;  %v723_v8 = vld [vmem:[#allocation5 + $0x64] ss:$8 sps:$4 sm:$0xff]   ;;  %v725_v9 = vld [vmem:[#allocation5 + $0x60] ss:$8 sps:$4 sm:$0xff]   ;;  %v726_v10 = vld [vmem:[#allocation5 + $0x54] ss:$8 sps:$4 sm:$0xff]  }
  0x29   :  { %400 = vmatprep.subr.bf16.mxu1 %v720_v6  ;;  %v728_v11 = vld [vmem:[#allocation5 + $0x50] ss:$8 sps:$4 sm:$0xff]   ;;  %v729_v12 = vld [vmem:[#allocation5 + $0x44] ss:$8 sps:$4 sm:$0xff]   ;;  %v731_v13 = vld [vmem:[#allocation5 + $0x40] ss:$8 sps:$4 sm:$0xff]  }
  0x2a   :  { %658 = vmatmul.mubr.msk.bf16.vlgmr.msra.gmra.mxu0 %vm116_vm0, %v53_v3  ;;  %v732_v14 = vld [vmem:[#allocation5 + $0x34] ss:$8 sps:$4 sm:$0xff]   ;;  %v734_v15 = vld [vmem:[#allocation5 + $0x30] ss:$8 sps:$4 sm:$0xff]   ;;  %v735_v16 = vld [vmem:[#allocation5 + $0x24] ss:$8 sps:$4 sm:$0xff]  }
  0x2b   :  { %v737_v17 = vld [vmem:[#allocation5 + $0x20] ss:$8 sps:$4 sm:$0xff]   ;;  %v738_v18 = vld [vmem:[#allocation5 + $0x14] ss:$8 sps:$4 sm:$0xff]   ;;  %v740_v19 = vld [vmem:[#allocation5 + $0x10] ss:$8 sps:$4 sm:$0xff]  }
  0x2c   :  { %401 = vmatpush1.bf16.msra.mxu1 %v722_v7  ;;  %v741_v20 = vld [vmem:[#allocation5 + $0x104] ss:$8 sps:$4 sm:$0xff]   ;;  %v743_v21 = vld [vmem:[#allocation5 + $0x100] ss:$8 sps:$4 sm:$0xff]   ;;  %v744_v22 = vld [vmem:[#allocation5 + $0xf4] ss:$8 sps:$4 sm:$0xff]  }
  0x2d   :  { %402 = vmatprep.subr.bf16.mxu1 %v723_v8  ;;  %v746_v23 = vld [vmem:[#allocation5 + $0xf0] ss:$8 sps:$4 sm:$0xff]   ;;  %v747_v24 = vld [vmem:[#allocation5 + $0xe4] ss:$8 sps:$4 sm:$0xff]   ;;  %v749_v25 = vld [vmem:[#allocation5 + $0xe0] ss:$8 sps:$4 sm:$0xff]  }
  0x2e   :  { %v750_v26 = vld [vmem:[#allocation5 + $0xd4] ss:$8 sps:$4 sm:$0xff]   ;;  %v752_v27 = vld [vmem:[#allocation5 + $0xd0] ss:$8 sps:$4 sm:$0xff]   ;;  %v753_v28 = vld [vmem:[#allocation5 + $0xc4] ss:$8 sps:$4 sm:$0xff]  }
  0x2f   :  { %v755_v29 = vld [vmem:[#allocation5 + $0xc0] ss:$8 sps:$4 sm:$0xff]   ;;  %v756_v30 = vld [vmem:[#allocation5 + $0xb4] ss:$8 sps:$4 sm:$0xff]   ;;  %v758_v31 = vld [vmem:[#allocation5 + $0xb0] ss:$8 sps:$4 sm:$0xff]  }
  0x30   :  { %403 = vmatpush1.bf16.msra.mxu1 %v725_v9  ;;  %v759_v32 = vld [vmem:[#allocation5 + $0xa4] ss:$8 sps:$4 sm:$0xff]   ;;  %v761_v33 = vld [vmem:[#allocation5 + $0xa0] ss:$8 sps:$4 sm:$0xff]   ;;  %v762_v34 = vld [vmem:[#allocation5 + $0x94] ss:$8 sps:$4 sm:$0xff]  }
  0x31   :  { %404 = vmatprep.subr.bf16.mxu1 %v726_v10  ;;  %v764_v35 = vld [vmem:[#allocation5 + $0x90] ss:$8 sps:$4 sm:$0xff]   ;;  %v765_v36 = vld [vmem:[#allocation5 + $0x180] ss:$8 sps:$4 sm:$0xff]   ;;  %v767_v37 = vld [vmem:[#allocation5 + $0x184] ss:$8 sps:$4 sm:$0xff]  }
  0x32   :  { %599 = vmatprep.subr.bf16.mxu0 %v767_v37  ;;  %s889_s0 = smov [#allocation8]  }
  0x33   :  { %600 = vmatpush1.bf16.xpose.msra.mxu0 %v765_v36  ;;  %s646_s2 = sshll.u32 %s889_s0, 4  ;;  %s647_s2 = int_to_ptr.vmem [resolvable:$true] %s646_s2 }
  0x34   :  { %405 = vmatpush1.bf16.msra.mxu1 %v728_v11  ;;  %s857_s28 = scalar_lea.vmem %s647_s2, 128  ;;  %p862_p2 = scmp.lt.s32.totalorder %s647_s2, %s647_s2 }
  0x35   :  { %406 = vmatprep.subr.bf16.mxu1 %v729_v12  ;;  %p858_p1 = scmp.ne.s32.totalorder %s647_s2, %s857_s28  ;;  %p863_p3 = scmp.lt.s32.totalorder %s857_s28, %s857_s28 }
  0x37   :  { %p864_p4 = por %p863_p3, %p862_p2 }
  0x38   :  { %407 = vmatpush1.bf16.msra.mxu1 %v731_v13 }
  0x39   :  { %408 = vmatprep.subr.bf16.mxu1 %v732_v14  ;;  %p865_p5 = pnand %p864_p4, %p858_p1 }
  0x3c   :  { %409 = vmatpush1.bf16.msra.mxu1 %v734_v15 }
  0x3d   :  { %410 = vmatprep.subr.bf16.mxu1 %v735_v16  ;;  %v214_v16 = vlaneseq }
  0x40   :  { %411 = vmatpush1.bf16.msra.mxu1 %v737_v17  ;;  %v919_v17 = vshrl.u32 %v214_v16, 7 }
  0x41   :  { %412 = vmatprep.subr.bf16.mxu1 %v738_v18  ;;  %v921_v18 = vld [vmem:[#allocation7] sm:$0xff] }
  0x44   :  { %413 = vmatpush1.bf16.msra.mxu1 %v740_v19 }
  0x45   :  { %414 = vmatprep.subr.bf16.mxu1 %v741_v20  ;;  %v923_v20 = vld [vmem:[#allocation7 + $0x8] sm:$0xff] }
  0x48   :  { %415 = vmatpush2.bf16.msra.mxu1 %v743_v21 }
  0x49   :  { %416 = vmatprep.subr.bf16.mxu1 %v744_v22  ;;  %v216_v22 = vsub.s32 0, %v919_v17 }
  0x4c   :  { %417 = vmatpush2.bf16.msra.mxu1 %v746_v23 }
  0x4d   :  { %418 = vmatprep.subr.bf16.mxu1 %v747_v24 }
  0x50   :  { %419 = vmatpush2.bf16.msra.mxu1 %v749_v25 }
  0x51   :  { %420 = vmatprep.subr.bf16.mxu1 %v750_v26 }
  0x54   :  { %421 = vmatpush2.bf16.msra.mxu1 %v752_v27 }
  0x55   :  { %422 = vmatprep.subr.bf16.mxu1 %v753_v28  ;;  %v226_v28 = vsub.s32 1, %v919_v17 }
  0x58   :  { %423 = vmatpush2.bf16.msra.mxu1 %v755_v29 }
  0x59   :  { %424 = vmatprep.subr.bf16.mxu1 %v756_v30 }
  0x5c   :  { %425 = vmatpush2.bf16.msra.mxu1 %v758_v31 }
  0x5d   :  { %426 = vmatprep.subr.bf16.mxu1 %v759_v32 }
  0x60   :  { %427 = vmatpush2.bf16.msra.mxu1 %v761_v33 }
  0x61   :  { %428 = vmatprep.subr.bf16.mxu1 %v762_v34 }
  0x64   :  { %429 = vmatpush2.bf16.msra.mxu1 %v764_v35 }
  0xea   :  { %v154_v38 = vpop.f32.mrf.mxu0 }
  0xeb   :  { %v161_v39 = vrot.slane %v154_v38, 4  ;;  %v176_v40 = vmul.f32 %v154_v38, %v154_v38 }
  0xec   :  { %v156_v41 = vpop.f32.mrf.mxu0 }
  0xed   :  { %v162_v42 = vadd.f32 %v161_v39, %v154_v38  ;;  %v178_v43 = vrot.slane %v176_v40, 4  ;;  %v167_v44 = vrot.slane %v156_v41, 4  ;;  %v177_v45 = vmul.f32 %v156_v41, %v156_v41 }
  0xee   :  { %v158_v46 = vpop.f32.mrf.mxu0 }
  0xef   :  { %v163_v47 = vrot.slane %v162_v42, 2  ;;  %v179_v48 = vadd.f32 %v178_v43, %v176_v40  ;;  %v168_v49 = vadd.f32 %v167_v44, %v156_v41  ;;  %v184_v50 = vrot.slane %v177_v45, 4  ;;  %v770_v46 = vld [vmem:[#allocation5 + $0x174] ss:$8 sps:$4 sm:$0xff]  }
  0xf0   :  { %v159_v51 = vpop.f32.mrf.mxu0  ;;  %601 = vmatprep.subr.bf16.mxu0 %v770_v46 }
  0xf1   :  { %v164_v52 = vadd.f32 %v163_v47, %v162_v42  ;;  %v180_v53 = vrot.slane %v179_v48, 2  ;;  %v169_v54 = vrot.slane %v168_v49, 2  ;;  %v185_v55 = vadd.f32 %v184_v50, %v177_v45  ;;  %v768_v47 = vld [vmem:[#allocation5 + $0x170] ss:$8 sps:$4 sm:$0xff]   ;;  %v777_v51 = vld [vmem:[#allocation5 + $0x140] ss:$8 sps:$4 sm:$0xff]  }
  0xf2   :  { %602 = vmatpush1.bf16.xpose.msra.mxu0 %v768_v47  ;;  %v774_v50 = vld [vmem:[#allocation5 + $0x150] ss:$8 sps:$4 sm:$0xff]  }
  0xf3   :  { %v165_v56 = vrot.slane %v164_v52, 1  ;;  %v181_v57 = vadd.f32 %v180_v53, %v179_v48  ;;  %v170_v58 = vadd.f32 %v169_v54, %v168_v49  ;;  %v186_v59 = vrot.slane %v185_v55, 2  ;;  %v773_v48 = vld [vmem:[#allocation5 + $0x164] ss:$8 sps:$4 sm:$0xff]   ;;  %v771_v49 = vld [vmem:[#allocation5 + $0x160] ss:$8 sps:$4 sm:$0xff]  }
  0xf4   :  { %603 = vmatprep.subr.bf16.mxu0 %v773_v48  ;;  %v780_v53 = vld [vmem:[#allocation5 + $0x130] ss:$8 sps:$4 sm:$0xff]   ;;  %v785_v54 = vld [vmem:[#allocation5 + $0x124] ss:$8 sps:$4 sm:$0xff]  }
  0xf5   :  { %v166_v60 = vadd.f32 %v165_v56, %v164_v52  ;;  %v182_v61 = vrot.slane %v181_v57, 1  ;;  %v171_v62 = vrot.slane %v170_v58, 1  ;;  %v187_v63 = vadd.f32 %v186_v59, %v185_v55  ;;  %v782_v52 = vld [vmem:[#allocation5 + $0x134] ss:$8 sps:$4 sm:$0xff]   ;;  %v783_v55 = vld [vmem:[#allocation5 + $0x120] ss:$8 sps:$4 sm:$0xff]  }
  0xf6   :  { %v788_v56 = vld [vmem:[#allocation5 + $0x114] ss:$8 sps:$4 sm:$0xff]  }
  0xf7   :  { %v174_v0 = vmul.f32 0.125, %v166_v60  ;;  %v183_v1 = vadd.f32 %v182_v61, %v181_v57  ;;  %v172_v2 = vadd.f32 %v171_v62, %v170_v58  ;;  %v188_v3 = vrot.slane %v187_v63, 1  ;;  %v786_v57 = vld [vmem:[#allocation5 + $0x110] ss:$8 sps:$4 sm:$0xff]  }
  0xf9   :  { %v190_v4 = vmul.f32 0.125, %v183_v1  ;;  %v192_v5 = vmul.f32 %v174_v0, %v174_v0  ;;  %v189_v6 = vadd.f32 %v188_v3, %v187_v63  ;;  %v175_v7 = vmul.f32 0.125, %v172_v2 }
  0xfa   :  { %604 = vmatpush1.bf16.xpose.msra.mxu0 %v771_v49  ;;  %v503_v49 = vsub.s32 3, %v919_v17 }
  0xfb   :  { %v194_v8 = vsub.f32 %v190_v4, %v192_v5  ;;  %v191_v9 = vmul.f32 0.125, %v189_v6  ;;  %v193_v10 = vmul.f32 %v175_v7, %v175_v7 }
  0xfd   :  { %v196_v11 = vmax.f32 %v194_v8, 0.0  ;;  %v195_v12 = vsub.f32 %v191_v9, %v193_v10 }
  0xff   :  { %v198_v13 = vadd.f32 1e-05, %v196_v11  ;;  %v197_v14 = vmax.f32 %v195_v12, 0.0 }
 0x101   :  { %789 = vrsqrt.f32 %v198_v13  ;;  %v199_v15 = vadd.f32 1e-05, %v197_v14 }
 0x103   :  { %791 = vrsqrt.f32 %v199_v15 }
 0x10e   :  { %v790_v19 = vpop.eup %789 }
 0x10f   :  { %v202_v21 = vmul.f32 %v790_v19, %v921_v18 }
 0x110   :  { %v792_v23 = vpop.eup %791 }
 0x111   :  { %v203_v24 = vmul.f32 %v792_v23, %v923_v20  ;;  %v204_v25 = vmul.f32 %v202_v21, %v174_v0  ;;  %v217_v26 = vrot.slane %v202_v21, %v216_v22 }
 0x113   :  { %v205_v27 = vmul.f32 %v203_v24, %v175_v7  ;;  %v208_v29 = vrot.slane %v204_v25, 7  ;;  %v221_v31 = vrot.slane %v203_v24, %v216_v22  ;;  %v222_v33 = vmul.f32 %v217_v26, %v154_v38  ;;  %v776_v38 = vld [vmem:[#allocation5 + $0x154] ss:$8 sps:$4 sm:$0xff]  }
 0x114   :  { %605 = vmatprep.subr.bf16.mxu0 %v776_v38 }
 0x115   :  { %v209_v30 = vrot.slane %v205_v27, 7  ;;  %v212_v32 = vsub.f32 %v921_v18, %v208_v29  ;;  %v223_v36 = vmul.f32 %v221_v31, %v156_v41  ;;  %606 = vmatpush1.bf16.xpose.msra.mxu0 %v774_v50  ;;  %v779_v41 = vld [vmem:[#allocation5 + $0x144] ss:$8 sps:$4 sm:$0xff]  }
 0x116   :  { %607 = vmatprep.subr.bf16.mxu0 %v779_v41 }
 0x117   :  { %v213_v34 = vsub.f32 %v923_v20, %v209_v30  ;;  %v227_v35 = vrot.slane %v212_v32, %v226_v28 }
 0x119   :  { %v231_v37 = vrot.slane %v213_v34, %v226_v28  ;;  %v232_v39 = vadd.f32 %v227_v35, %v222_v33 }
 0x11b   :  { %v233_v40 = vadd.f32 %v231_v37, %v223_v36  ;;  %v234_v42 = vmax.f32 %v232_v39, 0.0 }
 0x11d   :  { %v235_v43 = vmax.f32 %v233_v40, 0.0  ;;  %v236_v45 = vpack.c.bf16 %v234_v42, %v234_v42  ;;  %608 = vmatpush1.bf16.xpose.msra.mxu0 %v777_v51 }
 0x11e   :  { %609 = vmatprep.subr.bf16.mxu0 %v782_v52 }
 0x11f   :  { %v237_v44 = vpack.c.bf16 %v235_v43, %v235_v43  ;;  %v493_v43 = vsub.s32 2, %v919_v17 }
 0x121   :  { %430 = vmatprep.mubr.bf16.mxu1 %v237_v44 }
 0x122   :  { %431 = vmatmul.mubr.bf16.vlgmr.msra.gmra.mxu1 %v236_v45 }
 0x125   :  { %610 = vmatpush1.bf16.xpose.msra.mxu0 %v780_v53 }
 0x126   :  { %611 = vmatprep.subr.bf16.mxu0 %v785_v54 }
 0x12d   :  { %612 = vmatpush1.bf16.xpose.msra.mxu0 %v783_v55 }
 0x12e   :  { %613 = vmatprep.subr.bf16.mxu0 %v788_v56 }
 0x135   :  { %614 = vmatpush1.bf16.xpose.msra.mxu0 %v786_v57 }
 0x1e2   :  { %v432_v58 = vpop.f32.mrf.mxu1 }
 0x1e3   :  { %v439_v59 = vrot.slane %v432_v58, 4  ;;  %v453_v60 = vmul.f32 %v432_v58, %v432_v58 }
 0x1e4   :  { %v434_v61 = vpop.f32.mrf.mxu1 }
 0x1e5   :  { %v440_v62 = vadd.f32 %v439_v59, %v432_v58  ;;  %v455_v63 = vrot.slane %v453_v60, 4  ;;  %v445_v0 = vrot.slane %v434_v61, 4  ;;  %v454_v1 = vmul.f32 %v434_v61, %v434_v61 }
 0x1e6   :  { %v436_v2 = vpop.f32.mrf.mxu1 }
 0x1e7   :  { %v441_v3 = vrot.slane %v440_v62, 2  ;;  %v456_v4 = vadd.f32 %v455_v63, %v453_v60  ;;  %v446_v5 = vadd.f32 %v445_v0, %v434_v61  ;;  %v461_v6 = vrot.slane %v454_v1, 4 }
 0x1e8   :  { %v437_v7 = vpop.f32.mrf.mxu1 }
 0x1e9   :  { %v442_v8 = vadd.f32 %v441_v3, %v440_v62  ;;  %v457_v9 = vrot.slane %v456_v4, 2  ;;  %v447_v10 = vrot.slane %v446_v5, 2  ;;  %v462_v11 = vadd.f32 %v461_v6, %v454_v1 }
 0x1ea   :  { %v517_v1 = vsub.s32 4, %v919_v17 }
 0x1eb   :  { %v443_v12 = vrot.slane %v442_v8, 1  ;;  %v458_v13 = vadd.f32 %v457_v9, %v456_v4  ;;  %v448_v14 = vadd.f32 %v447_v10, %v446_v5  ;;  %v463_v15 = vrot.slane %v462_v11, 2 }
 0x1ec   :  { %v518_v2 = vrot.slane %v921_v18, %v517_v1 }
 0x1ed   :  { %v444_v16 = vadd.f32 %v443_v12, %v442_v8  ;;  %v459_v19 = vrot.slane %v458_v13, 1  ;;  %v449_v21 = vrot.slane %v448_v14, 1  ;;  %v464_v22 = vadd.f32 %v463_v15, %v462_v11 }
 0x1ef   :  { %v451_v23 = vmul.f32 0.125, %v444_v16  ;;  %v460_v24 = vadd.f32 %v459_v19, %v458_v13  ;;  %v450_v25 = vadd.f32 %v449_v21, %v448_v14  ;;  %v465_v26 = vrot.slane %v464_v22, 1 }
 0x1f1   :  { %v467_v27 = vmul.f32 0.125, %v460_v24  ;;  %v469_v28 = vmul.f32 %v451_v23, %v451_v23  ;;  %v452_v29 = vmul.f32 0.125, %v450_v25  ;;  %v466_v30 = vadd.f32 %v465_v26, %v464_v22 }
 0x1f3   :  { %v471_v31 = vsub.f32 %v467_v27, %v469_v28  ;;  %v468_v32 = vmul.f32 0.125, %v466_v30  ;;  %v470_v33 = vmul.f32 %v452_v29, %v452_v29 }
 0x1f5   :  { %v473_v34 = vmax.f32 %v471_v31, 0.0  ;;  %v472_v35 = vsub.f32 %v468_v32, %v470_v33 }
 0x1f7   :  { %v475_v36 = vadd.f32 1e-05, %v473_v34  ;;  %v474_v37 = vmax.f32 %v472_v35, 0.0 }
 0x1f9   :  { %793 = vrsqrt.f32 %v475_v36  ;;  %v476_v39 = vadd.f32 1e-05, %v474_v37 }
 0x1fb   :  { %795 = vrsqrt.f32 %v476_v39 }
 0x206   :  { %v794_v40 = vpop.eup %793 }
 0x207   :  { %v479_v42 = vmul.f32 %v794_v40, %v921_v18 }
 0x208   :  { %v796_v44 = vpop.eup %795 }
 0x209   :  { %v481_v45 = vmul.f32 %v479_v42, %v451_v23  ;;  %v480_v46 = vmul.f32 %v796_v44, %v923_v20  ;;  %v494_v48 = vrot.slane %v479_v42, %v493_v43 }
 0x20b   :  { %v485_v47 = vrot.slane %v481_v45, 7  ;;  %v482_v38 = vmul.f32 %v480_v46, %v452_v29  ;;  %v498_v41 = vrot.slane %v480_v46, %v493_v43  ;;  %v499_v52 = vmul.f32 %v494_v48, %v432_v58 }
 0x20d   :  { %v489_v50 = vsub.f32 %v921_v18, %v485_v47  ;;  %v486_v51 = vrot.slane %v482_v38, 7  ;;  %v500_v56 = vmul.f32 %v498_v41, %v434_v61 }
 0x20f   :  { %v504_v53 = vrot.slane %v489_v50, %v503_v49  ;;  %v490_v54 = vsub.f32 %v923_v20, %v486_v51 }
 0x211   :  { %v509_v55 = vadd.f32 %v504_v53, %v499_v52  ;;  %v508_v57 = vrot.slane %v490_v54, %v503_v49 }
 0x213   :  { %v510_v59 = vadd.f32 %v508_v57, %v500_v56  ;;  %v511_v60 = vmax.f32 %v509_v55, 0.0 }
 0x215   :  { %v512_v62 = vmax.f32 %v510_v59, 0.0  ;;  %v513_v0 = vpack.c.bf16 %v511_v60, %v511_v60 }
 0x217   :  { %v514_v63 = vpack.c.bf16 %v512_v62, %v512_v62 }
 0x219   :  { %631 = vmatprep.mubr.bf16.mxu0 %v514_v63 }
 0x21a   :  { %632 = vmatmul.mubr.bf16.vlgmr.msra.gmra.mxu0 %v513_v0 }
 0x2da   :  { %v633_v58 = vpop.f32.mrf.mxu0 }
 0x2db   :  { %v634_v3 = vadd.f32 %v633_v58, %v518_v2 }
 0x2dc   :  { %v635_v20 = vpop.f32.mrf.mxu0 }
 0x2dd   :  { %639 = vst [vmem:[#allocation8] sm:$0xff] %v634_v3 }
 0x2de   :  { %v636_v61 = vpop.f32.mrf.mxu0 }
 0x2df   :  { %868 = shalt.err (!%p865_p5)
}
 0x2e0   :  { %649 = dma.vmem_to_hbm [thread:$0]  %s647_s2, 128, %s945_s3, [#allocation4]   ;;  %v637_v17 = vpop.f32.mrf.mxu0 }
 0x2e1   :  { %881 = dma.done.wait [#allocation4], 128  }
 0x2e2   :  { %882 = vsyncadd [#allocation4], 4294967168 }
 0x2e3   :  { %653 = vsyncpa [#allocation3], 1 }
 0x2e4   :  { %654 = vsyncpa [#allocation6], 1 }
 0x2e5   :  { %655 = vsyncpa [#allocation4], 1 }

</bundles_post_ra>
